<compile_context>
chip_gen: v7x
topology: tpu7x:2x2x1
jax: 0.10.0
libtpu: 0.0.40
codegen_flags: <defaults>
</compile_context>

<pallas_src>
import functools

import jax
import jax.numpy as jnp
import numpy as np
from jax.experimental import pallas as pl
from jax.experimental.pallas import tpu as pltpu

WS = 512                    # STFT window size
STEP = 256                  # hop
F_TRUE = WS // 2 + 1        # 257 rfft bins
F_MM = 256                  # cos bins 0..255 go through the MXU
LOG_EPS = 1e-4
MAX_FRAME_TILE = 256        # frames per grid step (M = 2*tile after concat)


# ----------------------------------------------------------------------------
# Module-level DFT matrix (Hann window + ortho 1/sqrt(WS) scale folded in).
# Layout (WS, 512):
#   cols 0..255   : cos(2*pi*n*k/WS) * win/sqrt(WS), k = 0..255
#   col  256      : cos(pi*n)        * win/sqrt(WS)  (Nyquist k=256; its sin
#                                                     column is identically 0)
#   cols 257..511 : sin(2*pi*n*k/WS) * win/sqrt(WS), k = 1..255
# ----------------------------------------------------------------------------
def _build_dft_matrix():
    n = np.arange(WS, dtype=np.float64)
    win = 0.5 - 0.5 * np.cos(2.0 * np.pi * n / WS)     # torch.hann_window (periodic)
    scale = win / np.sqrt(WS)
    r = np.zeros((WS, 2 * F_MM), dtype=np.float64)
    k_cos = np.arange(F_MM, dtype=np.float64)
    r[:, :F_MM] = np.cos(2.0 * np.pi * np.outer(n, k_cos) / WS) * scale[:, None]
    r[:, F_MM] = np.cos(np.pi * n) * scale
    k_sin = np.arange(1, F_MM, dtype=np.float64)
    r[:, F_MM + 1:] = np.sin(2.0 * np.pi * np.outer(n, k_sin) / WS) * scale[:, None]
    return r.astype(np.float32)


_DFT_MATRIX_F32 = _build_dft_matrix()


# ----------------------------------------------------------------------------
# Fused kernel: windowed real-DFT (one shared-RHS matmul) + magnitude +
# squared-error accumulation over frame tiles.
# ----------------------------------------------------------------------------
def _stft_loss_kernel(fi_ref, ft_ref, r_ref, o_ref, acc_ref, *,
                      n_frames, log_amp):
    # fi_ref / ft_ref : (1, bt, WS) bf16 frame tiles (input / target)
    # r_ref           : (WS, 512)   bf16 packed DFT matrix
    # o_ref           : (1, 8, 128) f32 lane-dense scalar output (replicated)
    # acc_ref         : (1, 1)      f32 scratch accumulator (per batch element)
    f_idx = pl.program_id(1)

    @pl.when(f_idx == 0)
    def _():
        acc_ref[...] = jnp.zeros_like(acc_ref)

    fi = fi_ref[0]                                    # (bt, WS) bf16
    ftg = ft_ref[0]                                   # (bt, WS) bf16
    bt = fi.shape[0]

    # Share the RHS weight push between input and target: one (2*bt, 512) dot.
    lhs = jnp.concatenate([fi, ftg], axis=0)          # (2bt, WS) bf16
    res = jnp.dot(lhs, r_ref[...],
                  preferred_element_type=jnp.float32)  # (2bt, 512) f32

    re = res[:, :F_MM]                                # re for bins 0..255
    other = res[:, F_MM:]                             # col0 = re@Nyquist, rest = im 1..255
    col0 = jax.lax.broadcasted_iota(jnp.int32, (1, F_MM), 1) == 0
    im = jnp.where(col0, 0.0, other)                  # im for bins 0..255 (bin0 im = 0)
    nyq_re = jnp.where(col0, other, 0.0)              # only lane 0 is meaningful

    mag = jnp.sqrt(re * re + im * im)                 # bins 0..255
    mag_nyq = jnp.abs(nyq_re)                         # bin 256 in lane 0, zeros elsewhere
    if log_amp:
        mag = jnp.log(mag + LOG_EPS)
        mag_nyq = jnp.log(mag_nyq + LOG_EPS)          # non-lane-0 cols cancel in the diff

    d = mag[:bt] - mag[bt:]                           # (bt, 256)
    dn = mag_nyq[:bt] - mag_nyq[bt:]                  # only lane 0 contributes
    dd = d * d + dn * dn

    row = jnp.sum(dd, axis=1, keepdims=True)          # (bt, 1)
    acc_ref[...] += jnp.sum(row, axis=0, keepdims=True)

    @pl.when(f_idx == pl.num_programs(1) - 1)
    def _():
        loss = acc_ref[...] * (1.0 / float(n_frames * F_TRUE))  # mean over (T, 257)
        o_ref[...] = jnp.broadcast_to(loss, o_ref.shape)


# ----------------------------------------------------------------------------
# Wrapper glue
# ----------------------------------------------------------------------------
def _frame_and_pad(x, n_frames, n_frames_pad):
    # x: (B, n_samples) -> (B, n_frames_pad, WS) bf16; matches torch .unfold.
    # Zero frames beyond n_frames contribute exactly 0 to the loss.
    idx = jnp.arange(n_frames)[:, None] * STEP + jnp.arange(WS)[None, :]
    fr = x[:, idx]
    if n_frames_pad > n_frames:
        fr = jnp.pad(fr, ((0, 0), (0, n_frames_pad - n_frames), (0, 0)))
    return fr.astype(jnp.bfloat16)


@functools.partial(jax.jit, static_argnames=("n_samples", "log_amp"))
def stft_loss_forward(inp, tgt, n_samples, log_amp=False):
    """Forward pass of STFTLoss: returns per-batch loss, shape (batch,)."""
    batch = inp.shape[0]
    x = jnp.sum(inp.reshape(batch, -1, n_samples), axis=1)   # sum over stems (f32)
    # TODO(synk): multi-channel targets have ill-defined broadcast semantics in
    # the original module; we assume a single-channel target (as in practice).
    t = tgt.reshape(-1, n_samples)
    assert t.shape[0] == batch, "target must be single-channel per batch element"

    n_frames = (n_samples - WS) // STEP + 1
    bt = min(MAX_FRAME_TILE, ((n_frames + 15) // 16) * 16)   # frame-tile (mult of 16)
    n_ft = -(-n_frames // bt)
    n_frames_pad = n_ft * bt

    frames_i = _frame_and_pad(x, n_frames, n_frames_pad)     # (B, Tpad, WS) bf16
    frames_t = _frame_and_pad(t, n_frames, n_frames_pad)
    rmat = jnp.asarray(_DFT_MATRIX_F32, dtype=jnp.bfloat16)  # (WS, 512) bf16 const

    kernel = functools.partial(_stft_loss_kernel, n_frames=n_frames,
                               log_amp=log_amp)
    out = pl.pallas_call(
        kernel,
        out_shape=jax.ShapeDtypeStruct((batch, 8, 128), jnp.float32),
        grid=(batch, n_ft),
        in_specs=[
            pl.BlockSpec((1, bt, WS), lambda b, f: (b, f, 0)),
            pl.BlockSpec((1, bt, WS), lambda b, f: (b, f, 0)),
            pl.BlockSpec((WS, 2 * F_MM), lambda b, f: (0, 0)),
        ],
        out_specs=pl.BlockSpec((1, 8, 128), lambda b, f: (b, 0, 0)),
        scratch_shapes=[pltpu.VMEM((1, 1), jnp.float32)],
        compiler_params=pltpu.CompilerParams(
            dimension_semantics=("parallel", "arbitrary")),
    )(frames_i, frames_t, rmat)
    return out[:, 0, 0]


# ----------------------------------------------------------------------------
# Pure-JAX reference (jnp.fft, f32) for a correctness check
# ----------------------------------------------------------------------------
def _reference_loss(inp, tgt, n_samples, log_amp=False):
    batch = inp.shape[0]
    x = jnp.sum(inp.reshape(batch, -1, n_samples), axis=1)
    t = tgt.reshape(-1, n_samples)
    n_frames = (n_samples - WS) // STEP + 1
    win = 0.5 - 0.5 * jnp.cos(2.0 * jnp.pi * jnp.arange(WS) / WS)
    idx = jnp.arange(n_frames)[:, None] * STEP + jnp.arange(WS)[None, :]

    def spec(sig):
        fr = sig[:, idx] * win[None, None, :]
        sp = jnp.abs(jnp.fft.rfft(fr, axis=-1, norm="ortho"))
        if log_amp:
            sp = jnp.log(sp + LOG_EPS)
        return sp

    si, st = spec(x), spec(t)
    return jnp.mean((si - st) ** 2, axis=(1, 2))


if __name__ == "__main__":
    n_samples = 4096
    batch = 2
    channels = 4          # input stems; summed over dim 1 as in the module

    key = jax.random.PRNGKey(0)
    k1, k2 = jax.random.split(key)
    inp = jax.random.normal(k1, (batch, channels, n_samples), jnp.float32)
    tgt = jax.random.normal(k2, (batch, 1, n_samples), jnp.float32)

    loss = stft_loss_forward(inp, tgt, n_samples)
    jax.block_until_ready(loss)

    assert loss.shape == (batch,)
    assert bool(jnp.all(jnp.isfinite(loss)))

    ref = _reference_loss(inp, tgt, n_samples)
    assert bool(jnp.allclose(loss, ref, rtol=5e-2, atol=5e-2)), (loss, ref)

    # log-amplitude variant
    loss_log = stft_loss_forward(inp, tgt, n_samples, log_amp=True)
    jax.block_until_ready(loss_log)
    ref_log = _reference_loss(inp, tgt, n_samples, log_amp=True)
    assert bool(jnp.allclose(loss_log, ref_log, rtol=5e-2, atol=5e-2)), (loss_log, ref_log)

    print("KERNEL_OK")
</pallas_src>

<mosaic_0001>
module attributes {stable_mosaic.version = 11 : i64} {
  func.func @_stft_loss_kernel(%arg0: i32, %arg1: i32, %arg2: memref<1x16x512xbf16, #tpu.memory_space<vmem>>, %arg3: memref<1x16x512xbf16, #tpu.memory_space<vmem>>, %arg4: memref<512x512xbf16, #tpu.memory_space<vmem>>, %arg5: memref<1x8x128xf32, #tpu.memory_space<vmem>>, %arg6: memref<1x1xf32, #tpu.memory_space<vmem>>) attributes {dimension_semantics = [#tpu.dimension_semantics<parallel>, #tpu.dimension_semantics<arbitrary>], iteration_bounds = array<i64: 2, 1>, scalar_prefetch = 0 : i64, scratch_operands = 1 : i64, tpu.core_type = #tpu.core_type<tc>, window_params = [{transform_indices = @transform_0, window_bounds = array<i64: 1, 16, 512>}, {transform_indices = @transform_1, window_bounds = array<i64: 1, 16, 512>}, {pipeline_mode = #tpu.pipeline_mode<synchronous>, transform_indices = @transform_2, window_bounds = array<i64: 512, 512>}, {transform_indices = @transform_3, window_bounds = array<i64: 1, 8, 128>}]} {
    %c0_i32 = arith.constant 0 : i32
    %0 = arith.cmpi eq, %arg1, %c0_i32 : i32
    %1 = arith.extui %0 : i1 to i32
    %c0_i32_0 = arith.constant 0 : i32
    %2 = arith.cmpi ne, %1, %c0_i32_0 : i32
    scf.if %2 {
      %cst_19 = arith.constant 0.000000e+00 : f32
      %47 = vector.broadcast %cst_19 : f32 to vector<1x1xf32>
      %c0_20 = arith.constant 0 : index
      %c0_21 = arith.constant 0 : index
      %48 = vector.load %arg6[%c0_20, %c0_21] : memref<1x1xf32, #tpu.memory_space<vmem>>, vector<1x1xf32>
      tpu.vector_store %arg6[%c0_20, %c0_21], %47 {strides = array<i32>} : memref<1x1xf32, #tpu.memory_space<vmem>>, vector<1x1xf32>,
    } else {
    }
    %c0 = arith.constant 0 : index
    %c0_1 = arith.constant 0 : index
    %c0_2 = arith.constant 0 : index
    %3 = vector.load %arg2[%c0, %c0_1, %c0_2] : memref<1x16x512xbf16, #tpu.memory_space<vmem>>, vector<1x16x512xbf16>
    %4 = vector.shape_cast %3 : vector<1x16x512xbf16> to vector<16x512xbf16>
    %c0_3 = arith.constant 0 : index
    %c0_4 = arith.constant 0 : index
    %c0_5 = arith.constant 0 : index
    %5 = vector.load %arg3[%c0_3, %c0_4, %c0_5] : memref<1x16x512xbf16, #tpu.memory_space<vmem>>, vector<1x16x512xbf16>
    %6 = vector.shape_cast %5 : vector<1x16x512xbf16> to vector<16x512xbf16>
    %7 = tpu.concatenate %4, %6 in 0 : vector<16x512xbf16>, vector<16x512xbf16> -> vector<32x512xbf16>
    %c0_6 = arith.constant 0 : index
    %c0_7 = arith.constant 0 : index
    %8 = vector.load %arg4[%c0_6, %c0_7] : memref<512x512xbf16, #tpu.memory_space<vmem>>, vector<512x512xbf16>
    %cst = arith.constant dense<0.000000e+00> : vector<32x512xf32>
    %9 = tpu.matmul %7, %8, %cst {dimension_numbers = #tpu.dot_dimension_numbers<[1], [0], [0], [1], [0, 0, 1, 1], [], []>} : vector<32x512xbf16>, vector<512x512xbf16>, vector<32x512xf32> -> vector<32x512xf32>
    %10 = vector.extract_strided_slice %9 {offsets = [0, 0], sizes = [32, 256], strides = [1, 1]} : vector<32x512xf32> to vector<32x256xf32>
    %11 = vector.extract_strided_slice %9 {offsets = [0, 256], sizes = [32, 256], strides = [1, 1]} : vector<32x512xf32> to vector<32x256xf32>
    %12 = tpu.iota {dimensions = array<i32: 1>} : vector<1x256xi32>
    %c0_i32_8 = arith.constant 0 : i32
    %13 = vector.broadcast %c0_i32_8 : i32 to vector<1x256xi32>
    %14 = arith.cmpi eq, %12, %13 : vector<1x256xi32>
    %cst_9 = arith.constant 0.000000e+00 : f32
    %15 = vector.shape_cast %14 : vector<1x256xi1> to vector<1x256xi1>
    %16 = vector.broadcast %15 : vector<1x256xi1> to vector<32x256xi1>
    %17 = vector.broadcast %cst_9 : f32 to vector<32x256xf32>
    %18 = arith.select %16, %17, %11 : vector<32x256xi1>, vector<32x256xf32>
    %cst_10 = arith.constant 0.000000e+00 : f32
    %19 = vector.shape_cast %14 : vector<1x256xi1> to vector<1x256xi1>
    %20 = vector.broadcast %19 : vector<1x256xi1> to vector<32x256xi1>
    %21 = vector.broadcast %cst_10 : f32 to vector<32x256xf32>
    %22 = arith.select %20, %11, %21 : vector<32x256xi1>, vector<32x256xf32>
    %23 = arith.mulf %10, %10 : vector<32x256xf32>
    %24 = arith.mulf %18, %18 : vector<32x256xf32>
    %25 = arith.addf %23, %24 : vector<32x256xf32>
    %26 = math.sqrt %25 : vector<32x256xf32>
    %27 = math.absf %22 : vector<32x256xf32>
    %28 = vector.extract_strided_slice %26 {offsets = [0, 0], sizes = [16, 256], strides = [1, 1]} : vector<32x256xf32> to vector<16x256xf32>
    %29 = vector.extract_strided_slice %26 {offsets = [16, 0], sizes = [16, 256], strides = [1, 1]} : vector<32x256xf32> to vector<16x256xf32>
    %30 = arith.subf %28, %29 : vector<16x256xf32>
    %31 = vector.extract_strided_slice %27 {offsets = [0, 0], sizes = [16, 256], strides = [1, 1]} : vector<32x256xf32> to vector<16x256xf32>
    %32 = vector.extract_strided_slice %27 {offsets = [16, 0], sizes = [16, 256], strides = [1, 1]} : vector<32x256xf32> to vector<16x256xf32>
    %33 = arith.subf %31, %32 : vector<16x256xf32>
    %34 = arith.mulf %30, %30 : vector<16x256xf32>
    %35 = arith.mulf %33, %33 : vector<16x256xf32>
    %36 = arith.addf %34, %35 : vector<16x256xf32>
    %cst_11 = arith.constant dense<0.000000e+00> : vector<16xf32>
    %37 = vector.multi_reduction <add>, %36, %cst_11 [1] : vector<16x256xf32> to vector<16xf32>
    %38 = vector.shape_cast %37 : vector<16xf32> to vector<16x1xf32>
    %c0_12 = arith.constant 0 : index
    %c0_13 = arith.constant 0 : index
    %39 = vector.load %arg6[%c0_12, %c0_13] : memref<1x1xf32, #tpu.memory_space<vmem>>, vector<1x1xf32>
    %cst_14 = arith.constant dense<0.000000e+00> : vector<1xf32>
    %40 = vector.multi_reduction <add>, %38, %cst_14 [0] : vector<16x1xf32> to vector<1xf32>
    %41 = vector.shape_cast %40 : vector<1xf32> to vector<1x1xf32>
    %42 = arith.addf %39, %41 : vector<1x1xf32>
    %c0_15 = arith.constant 0 : index
    %c0_16 = arith.constant 0 : index
    %43 = vector.load %arg6[%c0_15, %c0_16] : memref<1x1xf32, #tpu.memory_space<vmem>>, vector<1x1xf32>
    tpu.vector_store %arg6[%c0_15, %c0_16], %42 {strides = array<i32>} : memref<1x1xf32, #tpu.memory_space<vmem>>, vector<1x1xf32>,
    %c0_i32_17 = arith.constant 0 : i32
    %44 = arith.cmpi eq, %arg1, %c0_i32_17 : i32
    %45 = arith.extui %44 : i1 to i32
    %c0_i32_18 = arith.constant 0 : i32
    %46 = arith.cmpi ne, %45, %c0_i32_18 : i32
    scf.if %46 {
      %c0_19 = arith.constant 0 : index
      %c0_20 = arith.constant 0 : index
      %47 = vector.load %arg6[%c0_19, %c0_20] : memref<1x1xf32, #tpu.memory_space<vmem>>, vector<1x1xf32>
      %cst_21 = arith.constant 2.59403372E-4 : f32
      %48 = vector.broadcast %cst_21 : f32 to vector<1x1xf32>
      %49 = arith.mulf %47, %48 : vector<1x1xf32>
      %50 = vector.shape_cast %49 : vector<1x1xf32> to vector<1x1x1xf32>
      %51 = vector.broadcast %50 : vector<1x1x1xf32> to vector<1x8x128xf32>
      %c0_22 = arith.constant 0 : index
      %c0_23 = arith.constant 0 : index
      %c0_24 = arith.constant 0 : index
      %52 = vector.load %arg5[%c0_22, %c0_23, %c0_24] : memref<1x8x128xf32, #tpu.memory_space<vmem>>, vector<1x8x128xf32>
      tpu.vector_store %arg5[%c0_22, %c0_23, %c0_24], %51 {strides = array<i32>} : memref<1x8x128xf32, #tpu.memory_space<vmem>>, vector<1x8x128xf32>,
    } else {
    }
    return
  }
  func.func @transform_0(%arg0: i32, %arg1: i32) -> (i32, i32, i32) {
    %c0_i32 = arith.constant 0 : i32
    %c0_i32_0 = arith.constant 0 : i32
    return %arg0, %arg1, %c0_i32 : i32, i32, i32
  }
  func.func @transform_1(%arg0: i32, %arg1: i32) -> (i32, i32, i32) {
    %c0_i32 = arith.constant 0 : i32
    %c0_i32_0 = arith.constant 0 : i32
    return %arg0, %arg1, %c0_i32 : i32, i32, i32
  }
  func.func @transform_2(%arg0: i32, %arg1: i32) -> (i32, i32) {
    %c0_i32 = arith.constant 0 : i32
    %c0_i32_0 = arith.constant 0 : i32
    %c0_i32_1 = arith.constant 0 : i32
    return %c0_i32, %c0_i32_0 : i32, i32
  }
  func.func @transform_3(%arg0: i32, %arg1: i32) -> (i32, i32, i32) {
    %c0_i32 = arith.constant 0 : i32
    %c0_i32_0 = arith.constant 0 : i32
    %c0_i32_1 = arith.constant 0 : i32
    return %arg0, %c0_i32, %c0_i32_0 : i32, i32, i32
  }
}

</mosaic_0001>

<bundles_post_ra>
// kernel: stft_loss_forward.1
= control target key start
LH: loop header
LB: loop body
LE: loop exit
PB: predicated region body
PF: predicated region fallthrough
CT: control target
= control target key end

     0   :  { %s1989_s12 = smov 0   ;;  %s1991_s13 = smov 0   ;;  %s2527_s0 = inlined_call_operand.vmem [shape: bf16[2,16,512], index: 0, kind: input, shape index: {}]   ;;  %s2528_s1 = inlined_call_operand.vmem [shape: bf16[2,16,512], index: 1, kind: input, shape index: {}]   ;;  %s2529_s2 = inlined_call_operand.vmem [shape: bf16[512,512], index: 2, kind: input, shape index: {}]   ;;  %s2530_s3 = inlined_call_operand.vmem [shape: f32[2,8,128], index: 3, kind: output, shape index: {}]  }
   0x1   :  { %s1993_s14 = smov 0  }
   0x2 LB: > { %s25_s15 = sadd.s32 1, %s1961_s13  ;;  %p1533_p0 = scmp.ge.s32.totalorder %s1965_s14, 1  ;;  %s1965_s14 = sphi %s1993_s14, %s13_s14   ;;  %s1961_s13 = sphi %s1991_s13, %s2532_s13   ;;  %s1957_s12 = sphi %s1989_s12, %s2531_s12  }
   0x3   : > { %p27_p1 = scmp.ge.s32.totalorder %s25_s15, 2  ;;  %p175_p2 = scmp.lt.s32.totalorder %s1965_s14, 3 }
   0x5   : > { %s2534_s15 = smov (%p27_p1, %s25_s15), 0  ;;  %p176_p3 = pnand %p1533_p0, %p175_p2 }
   0x6   : > { %v1723_v0 = vld [vmem:[%s2529_s2 + $0x4] ss:$16 sps:$4 sm:$0xff] (!%p176_p3)   ;;  %v1725_v1 = vld [vmem:[%s2529_s2 + $0xc] ss:$16 sps:$4 sm:$0xff] (!%p176_p3)   ;;  %v1727_v2 = vld [vmem:[%s2529_s2] ss:$16 sps:$4 sm:$0xff] (!%p176_p3)  }
   0x7   : > { %179 = sbr.rel (%p176_p3) target bundleno = 686 (0x2ae), region = 32  ;;  %1061 = vmatprep.subr.bf16.mxu0 (!%p176_p3), %v1723_v0  ;;  %v1728_v3 = vld [vmem:[%s2529_s2 + $0x8] ss:$16 sps:$4 sm:$0xff] (!%p176_p3)   ;;  %1167 = vmatprep.subr.bf16.mxu1 (!%p176_p3), %v1725_v1  ;;  %v1729_v4 = vld [vmem:[%s2529_s2 + $0x24] ss:$16 sps:$4 sm:$0xff] (!%p176_p3)   ;;  %p214_p4 = scmp.lt.s32.totalorder (!%p176_p3), %s1957_s12, 1 }
   0x8   : > { %1062 = vmatpush1.bf16.msra.mxu0 (!%p176_p3), %v1727_v2  ;;  %1168 = vmatpush1.bf16.msra.mxu1 (!%p176_p3), %v1728_v3  ;;  %v1731_v5 = vld [vmem:[%s2529_s2 + $0x2c] ss:$16 sps:$4 sm:$0xff] (!%p176_p3)   ;;  %v1733_v6 = vld [vmem:[%s2529_s2 + $0x20] ss:$16 sps:$4 sm:$0xff] (!%p176_p3)   ;;  %v1734_v7 = vld [vmem:[%s2529_s2 + $0x28] ss:$16 sps:$4 sm:$0xff] (!%p176_p3)  }
   0x9   : > { %1063 = vmatprep.subr.bf16.mxu0 (!%p176_p3), %v1729_v4  ;;  %1169 = vmatprep.subr.bf16.mxu1 (!%p176_p3), %v1731_v5  ;;  %v1735_v8 = vld [vmem:[%s2529_s2 + $0x44] ss:$16 sps:$4 sm:$0xff] (!%p176_p3)   ;;  %v1737_v9 = vld [vmem:[%s2529_s2 + $0x4c] ss:$16 sps:$4 sm:$0xff] (!%p176_p3)   ;;  %v1739_v10 = vld [vmem:[%s2529_s2 + $0x40] ss:$16 sps:$4 sm:$0xff] (!%p176_p3)  }
   0xa   : > { %v1740_v11 = vld [vmem:[%s2529_s2 + $0x48] ss:$16 sps:$4 sm:$0xff] (!%p176_p3)   ;;  %v1741_v12 = vld [vmem:[%s2529_s2 + $0x64] ss:$16 sps:$4 sm:$0xff] (!%p176_p3)   ;;  %v1743_v13 = vld [vmem:[%s2529_s2 + $0x6c] ss:$16 sps:$4 sm:$0xff] (!%p176_p3)  }
   0xb   : > { %v1745_v14 = vld [vmem:[%s2529_s2 + $0x60] ss:$16 sps:$4 sm:$0xff] (!%p176_p3)   ;;  %v1746_v15 = vld [vmem:[%s2529_s2 + $0x68] ss:$16 sps:$4 sm:$0xff] (!%p176_p3)   ;;  %v1747_v16 = vld [vmem:[%s2529_s2 + $0x84] ss:$16 sps:$4 sm:$0xff] (!%p176_p3)  }
   0xc   : > { %1064 = vmatpush1.bf16.msra.mxu0 (!%p176_p3), %v1733_v6  ;;  %1170 = vmatpush1.bf16.msra.mxu1 (!%p176_p3), %v1734_v7  ;;  %v1749_v17 = vld [vmem:[%s2529_s2 + $0x8c] ss:$16 sps:$4 sm:$0xff] (!%p176_p3)   ;;  %v1751_v18 = vld [vmem:[%s2529_s2 + $0x80] ss:$16 sps:$4 sm:$0xff] (!%p176_p3)   ;;  %v1752_v19 = vld [vmem:[%s2529_s2 + $0x88] ss:$16 sps:$4 sm:$0xff] (!%p176_p3)  }
   0xd   : > { %1065 = vmatprep.subr.bf16.mxu0 (!%p176_p3), %v1735_v8  ;;  %1171 = vmatprep.subr.bf16.mxu1 (!%p176_p3), %v1737_v9  ;;  %v1753_v20 = vld [vmem:[%s2529_s2 + $0xa4] ss:$16 sps:$4 sm:$0xff] (!%p176_p3)   ;;  %v1755_v21 = vld [vmem:[%s2529_s2 + $0xac] ss:$16 sps:$4 sm:$0xff] (!%p176_p3)   ;;  %v1757_v22 = vld [vmem:[%s2529_s2 + $0xa0] ss:$16 sps:$4 sm:$0xff] (!%p176_p3)  }
   0xe   : > { %v1758_v23 = vld [vmem:[%s2529_s2 + $0xa8] ss:$16 sps:$4 sm:$0xff]   ;;  %v1759_v24 = vld [vmem:[%s2529_s2 + $0xc4] ss:$16 sps:$4 sm:$0xff]   ;;  %v1761_v25 = vld [vmem:[%s2529_s2 + $0xcc] ss:$16 sps:$4 sm:$0xff]  }
   0xf   : > { %v1763_v26 = vld [vmem:[%s2529_s2 + $0xc0] ss:$16 sps:$4 sm:$0xff]   ;;  %v1764_v27 = vld [vmem:[%s2529_s2 + $0xc8] ss:$16 sps:$4 sm:$0xff]   ;;  %v1765_v28 = vld [vmem:[%s2529_s2 + $0xe4] ss:$16 sps:$4 sm:$0xff]  }
  0x10   : > { %1066 = vmatpush1.bf16.msra.mxu0 %v1739_v10  ;;  %1172 = vmatpush1.bf16.msra.mxu1 %v1740_v11  ;;  %v1767_v29 = vld [vmem:[%s2529_s2 + $0xec] ss:$16 sps:$4 sm:$0xff]   ;;  %v1769_v30 = vld [vmem:[%s2529_s2 + $0xe0] ss:$16 sps:$4 sm:$0xff]   ;;  %v1770_v31 = vld [vmem:[%s2529_s2 + $0xe8] ss:$16 sps:$4 sm:$0xff]  }
  0x11   : > { %1067 = vmatprep.subr.bf16.mxu0 %v1741_v12  ;;  %1173 = vmatprep.subr.bf16.mxu1 %v1743_v13  ;;  %v1771_v32 = vld [vmem:[%s2529_s2 + $0x104] ss:$16 sps:$4 sm:$0xff]   ;;  %v1773_v33 = vld [vmem:[%s2529_s2 + $0x10c] ss:$16 sps:$4 sm:$0xff]   ;;  %v1775_v34 = vld [vmem:[%s2529_s2 + $0x100] ss:$16 sps:$4 sm:$0xff]  }
  0x12   : > { %v1776_v35 = vld [vmem:[%s2529_s2 + $0x108] ss:$16 sps:$4 sm:$0xff]   ;;  %v1777_v36 = vld [vmem:[%s2529_s2 + $0x124] ss:$16 sps:$4 sm:$0xff]   ;;  %v1779_v37 = vld [vmem:[%s2529_s2 + $0x12c] ss:$16 sps:$4 sm:$0xff]  }
  0x13   : > { %s2536_s12 = smov (!%p214_p4, %s1957_s12), 1  ;;  %v1781_v38 = vld [vmem:[%s2529_s2 + $0x120] ss:$16 sps:$4 sm:$0xff]   ;;  %v1782_v39 = vld [vmem:[%s2529_s2 + $0x128] ss:$16 sps:$4 sm:$0xff]  }
  0x14   : > { %1068 = vmatpush1.bf16.msra.mxu0 %v1745_v14  ;;  %1174 = vmatpush1.bf16.msra.mxu1 %v1746_v15  ;;  %v1783_v40 = vld [vmem:[%s2529_s2 + $0x144] ss:$16 sps:$4 sm:$0xff]   ;;  %v1785_v41 = vld [vmem:[%s2529_s2 + $0x14c] ss:$16 sps:$4 sm:$0xff]   ;;  %s1677_s4 = sshll.u32 %s2536_s12, 5 }
  0x15   : > { %1069 = vmatprep.subr.bf16.mxu0 %v1747_v16  ;;  %1175 = vmatprep.subr.bf16.mxu1 %v1749_v17  ;;  %v1787_v42 = vld [vmem:[%s2529_s2 + $0x140] ss:$16 sps:$4 sm:$0xff]   ;;  %v1788_v43 = vld [vmem:[%s2529_s2 + $0x148] ss:$16 sps:$4 sm:$0xff]   ;;  %v1789_v44 = vld [vmem:[%s2529_s2 + $0x164] ss:$16 sps:$4 sm:$0xff]   ;;  %s2154_s17 = scalar_lea.vmem %s2527_s0, %s1677_s4  ;;  %s2274_s5 = scalar_lea.vmem %s2528_s1, %s1677_s4 }
  0x16   : > { %v1791_v45 = vld [vmem:[%s2529_s2 + $0x16c] ss:$16 sps:$4 sm:$0xff]   ;;  %v1793_v46 = vld [vmem:[%s2529_s2 + $0x160] ss:$16 sps:$4 sm:$0xff]   ;;  %v1794_v47 = vld [vmem:[%s2529_s2 + $0x168] ss:$16 sps:$4 sm:$0xff]  }
  0x17   : > { %v1821_v48 = vld [vmem:[%s2154_s17 + $0x4] ss:$16 sps:$4 sm:$0xff]   ;;  %v1797_v50 = vld [vmem:[%s2529_s2 + $0x18c] ss:$16 sps:$4 sm:$0xff]   ;;  %v1799_v51 = vld [vmem:[%s2529_s2 + $0x180] ss:$16 sps:$4 sm:$0xff]  }
  0x18   : > { %1070 = vmatpush1.bf16.msra.mxu0 %v1751_v18  ;;  %1176 = vmatpush1.bf16.msra.mxu1 %v1752_v19  ;;  %v1795_v49 = vld [vmem:[%s2529_s2 + $0x184] ss:$16 sps:$4 sm:$0xff]   ;;  %v1800_v52 = vld [vmem:[%s2529_s2 + $0x188] ss:$16 sps:$4 sm:$0xff]   ;;  %v1803_v54 = vld [vmem:[%s2529_s2 + $0x1ac] ss:$16 sps:$4 sm:$0xff]  }
  0x19   : > { %1071 = vmatprep.subr.bf16.mxu0 %v1753_v20  ;;  %1177 = vmatprep.subr.bf16.mxu1 %v1755_v21  ;;  %v1801_v53 = vld [vmem:[%s2529_s2 + $0x1a4] ss:$16 sps:$4 sm:$0xff]   ;;  %v1805_v55 = vld [vmem:[%s2529_s2 + $0x1a0] ss:$16 sps:$4 sm:$0xff]   ;;  %v1806_v56 = vld [vmem:[%s2529_s2 + $0x1a8] ss:$16 sps:$4 sm:$0xff]  }
  0x1a   : > { %1093 = vmatprep.mubr.bf16.mxu0 %v1821_v48  ;;  %1199 = vmatprep.mubr.bf16.mxu1 %v1821_v48  ;;  %v1807_v57 = vld [vmem:[%s2529_s2 + $0x1c4] ss:$16 sps:$4 sm:$0xff]   ;;  %v1809_v58 = vld [vmem:[%s2529_s2 + $0x1cc] ss:$16 sps:$4 sm:$0xff]   ;;  %v1811_v59 = vld [vmem:[%s2529_s2 + $0x1c0] ss:$16 sps:$4 sm:$0xff]  }
  0x1b   : > { %v1812_v60 = vld [vmem:[%s2529_s2 + $0x1c8] ss:$16 sps:$4 sm:$0xff]   ;;  %v1813_v61 = vld [vmem:[%s2529_s2 + $0x1e4] ss:$16 sps:$4 sm:$0xff]   ;;  %v1815_v62 = vld [vmem:[%s2529_s2 + $0x1ec] ss:$16 sps:$4 sm:$0xff]  }
  0x1c   : > { %1072 = vmatpush1.bf16.msra.mxu0 %v1757_v22  ;;  %1178 = vmatpush1.bf16.msra.mxu1 %v1758_v23  ;;  %v1817_v63 = vld [vmem:[%s2529_s2 + $0x1e0] ss:$16 sps:$4 sm:$0xff]   ;;  %v1818_v0 = vld [vmem:[%s2529_s2 + $0x1e8] ss:$16 sps:$4 sm:$0xff]   ;;  %v1824_v1 = vld [vmem:[%s2529_s2 + $0x204] ss:$16 sps:$4 sm:$0xff]  }
  0x1d   : > { %1073 = vmatprep.subr.bf16.mxu0 %v1759_v24  ;;  %1179 = vmatprep.subr.bf16.mxu1 %v1761_v25  ;;  %v1827_v2 = vld [vmem:[%s2529_s2 + $0x20c] ss:$16 sps:$4 sm:$0xff]   ;;  %v1819_v3 = vld [vmem:[%s2154_s17] ss:$16 sps:$4 sm:$0xff]   ;;  %v1825_v5 = vld [vmem:[%s2529_s2 + $0x208] ss:$16 sps:$4 sm:$0xff]  }
  0x1e   : > { %v1822_v4 = vld [vmem:[%s2529_s2 + $0x200] ss:$16 sps:$4 sm:$0xff]   ;;  %v1830_v6 = vld [vmem:[%s2529_s2 + $0x224] ss:$16 sps:$4 sm:$0xff]   ;;  %v1833_v7 = vld [vmem:[%s2529_s2 + $0x22c] ss:$16 sps:$4 sm:$0xff]  }
  0x1f   : > { %v1828_v8 = vld [vmem:[%s2529_s2 + $0x220] ss:$16 sps:$4 sm:$0xff]   ;;  %v1831_v9 = vld [vmem:[%s2529_s2 + $0x228] ss:$16 sps:$4 sm:$0xff]   ;;  %v1836_v10 = vld [vmem:[%s2529_s2 + $0x244] ss:$16 sps:$4 sm:$0xff]  }
  0x20   : > { %1074 = vmatpush1.bf16.msra.mxu0 %v1763_v26  ;;  %1180 = vmatpush1.bf16.msra.mxu1 %v1764_v27  ;;  %v1839_v11 = vld [vmem:[%s2529_s2 + $0x24c] ss:$16 sps:$4 sm:$0xff]   ;;  %v1834_v12 = vld [vmem:[%s2529_s2 + $0x240] ss:$16 sps:$4 sm:$0xff]   ;;  %v1837_v13 = vld [vmem:[%s2529_s2 + $0x248] ss:$16 sps:$4 sm:$0xff]  }
  0x21   : > { %1075 = vmatprep.subr.bf16.mxu0 %v1765_v28  ;;  %1181 = vmatprep.subr.bf16.mxu1 %v1767_v29  ;;  %v1842_v14 = vld [vmem:[%s2529_s2 + $0x264] ss:$16 sps:$4 sm:$0xff]   ;;  %v1845_v15 = vld [vmem:[%s2529_s2 + $0x26c] ss:$16 sps:$4 sm:$0xff]   ;;  %v1840_v16 = vld [vmem:[%s2529_s2 + $0x260] ss:$16 sps:$4 sm:$0xff]  }
  0x22   : > { %v1843_v17 = vld [vmem:[%s2529_s2 + $0x268] ss:$16 sps:$4 sm:$0xff]   ;;  %v1848_v18 = vld [vmem:[%s2529_s2 + $0x284] ss:$16 sps:$4 sm:$0xff]   ;;  %v1851_v19 = vld [vmem:[%s2529_s2 + $0x28c] ss:$16 sps:$4 sm:$0xff]  }
  0x23   : > { %v1846_v20 = vld [vmem:[%s2529_s2 + $0x280] ss:$16 sps:$4 sm:$0xff]   ;;  %v1849_v21 = vld [vmem:[%s2529_s2 + $0x288] ss:$16 sps:$4 sm:$0xff]   ;;  %v1854_v22 = vld [vmem:[%s2529_s2 + $0x2a4] ss:$16 sps:$4 sm:$0xff]  }
  0x24   : > { %1076 = vmatpush1.bf16.msra.mxu0 %v1769_v30  ;;  %1182 = vmatpush1.bf16.msra.mxu1 %v1770_v31  ;;  %v1857_v23 = vld [vmem:[%s2529_s2 + $0x2ac] ss:$16 sps:$4 sm:$0xff]   ;;  %v1852_v24 = vld [vmem:[%s2529_s2 + $0x2a0] ss:$16 sps:$4 sm:$0xff]   ;;  %v1906_v25 = vld [vmem:[%s2274_s5 + $0x4] ss:$16 sps:$4 sm:$0xff]  }
  0x25   : > { %1077 = vmatprep.subr.bf16.mxu0 %v1771_v32  ;;  %1183 = vmatprep.subr.bf16.mxu1 %v1773_v33  ;;  %v1855_v26 = vld [vmem:[%s2529_s2 + $0x2a8] ss:$16 sps:$4 sm:$0xff]   ;;  %v1908_v27 = vld [vmem:[%s2274_s5] ss:$16 sps:$4 sm:$0xff]   ;;  %v1860_v28 = vld [vmem:[%s2529_s2 + $0x2c4] ss:$16 sps:$4 sm:$0xff]  }
  0x26   : > { %v1863_v29 = vld [vmem:[%s2529_s2 + $0x2cc] ss:$16 sps:$4 sm:$0xff]   ;;  %v1858_v30 = vld [vmem:[%s2529_s2 + $0x2c0] ss:$16 sps:$4 sm:$0xff]   ;;  %v1861_v31 = vld [vmem:[%s2529_s2 + $0x2c8] ss:$16 sps:$4 sm:$0xff]  }
  0x27   : > { %v1866_v32 = vld [vmem:[%s2529_s2 + $0x2e4] ss:$16 sps:$4 sm:$0xff]   ;;  %v1869_v33 = vld [vmem:[%s2529_s2 + $0x2ec] ss:$16 sps:$4 sm:$0xff]   ;;  %v1885_v48 = vld [vmem:[%s2529_s2 + $0x348] ss:$16 sps:$4 sm:$0xff]  }
  0x28   : > { %1078 = vmatpush1.bf16.msra.mxu0 %v1775_v34  ;;  %1184 = vmatpush1.bf16.msra.mxu1 %v1776_v35  ;;  %v1923_v34 = vld [vmem:[%s2154_s17 + $0xc] ss:$16 sps:$4 sm:$0xff]   ;;  %v1864_v35 = vld [vmem:[%s2529_s2 + $0x2e0] ss:$16 sps:$4 sm:$0xff]  }
  0x29   : > { %1079 = vmatprep.subr.bf16.mxu0 %v1777_v36  ;;  %1185 = vmatprep.subr.bf16.mxu1 %v1779_v37  ;;  %v1867_v36 = vld [vmem:[%s2529_s2 + $0x2e8] ss:$16 sps:$4 sm:$0xff]   ;;  %v1872_v37 = vld [vmem:[%s2529_s2 + $0x304] ss:$16 sps:$4 sm:$0xff]  }
  0x2c   : > { %1080 = vmatpush1.bf16.msra.mxu0 %v1781_v38  ;;  %1186 = vmatpush1.bf16.msra.mxu1 %v1782_v39  ;;  %v1875_v38 = vld [vmem:[%s2529_s2 + $0x30c] ss:$16 sps:$4 sm:$0xff]   ;;  %v1870_v39 = vld [vmem:[%s2529_s2 + $0x300] ss:$16 sps:$4 sm:$0xff]  }
  0x2d   : > { %1081 = vmatprep.subr.bf16.mxu0 %v1783_v40  ;;  %1187 = vmatprep.subr.bf16.mxu1 %v1785_v41  ;;  %v1873_v40 = vld [vmem:[%s2529_s2 + $0x308] ss:$16 sps:$4 sm:$0xff]   ;;  %v1878_v41 = vld [vmem:[%s2529_s2 + $0x324] ss:$16 sps:$4 sm:$0xff]  }
  0x30   : > { %1082 = vmatpush1.bf16.msra.mxu0 %v1787_v42  ;;  %1188 = vmatpush1.bf16.msra.mxu1 %v1788_v43  ;;  %v1881_v42 = vld [vmem:[%s2529_s2 + $0x32c] ss:$16 sps:$4 sm:$0xff]   ;;  %v1876_v43 = vld [vmem:[%s2529_s2 + $0x320] ss:$16 sps:$4 sm:$0xff]  }
  0x31   : > { %1083 = vmatprep.subr.bf16.mxu0 %v1789_v44  ;;  %1189 = vmatprep.subr.bf16.mxu1 %v1791_v45  ;;  %v1879_v44 = vld [vmem:[%s2529_s2 + $0x328] ss:$16 sps:$4 sm:$0xff]   ;;  %v1884_v45 = vld [vmem:[%s2529_s2 + $0x344] ss:$16 sps:$4 sm:$0xff]  }
  0x34   : > { %1084 = vmatpush1.bf16.msra.mxu0 %v1793_v46  ;;  %1190 = vmatpush1.bf16.msra.mxu1 %v1794_v47  ;;  %v1887_v46 = vld [vmem:[%s2529_s2 + $0x34c] ss:$16 sps:$4 sm:$0xff]   ;;  %v1882_v47 = vld [vmem:[%s2529_s2 + $0x340] ss:$16 sps:$4 sm:$0xff]  }
  0x35   : > { %1085 = vmatprep.subr.bf16.mxu0 %v1795_v49  ;;  %1191 = vmatprep.subr.bf16.mxu1 %v1797_v50  ;;  %v1890_v49 = vld [vmem:[%s2529_s2 + $0x364] ss:$16 sps:$4 sm:$0xff]   ;;  %v1893_v50 = vld [vmem:[%s2529_s2 + $0x36c] ss:$16 sps:$4 sm:$0xff]  }
  0x38   : > { %1086 = vmatpush1.bf16.msra.mxu0 %v1799_v51  ;;  %1192 = vmatpush1.bf16.msra.mxu1 %v1800_v52  ;;  %v1888_v51 = vld [vmem:[%s2529_s2 + $0x360] ss:$16 sps:$4 sm:$0xff]   ;;  %v1891_v52 = vld [vmem:[%s2529_s2 + $0x368] ss:$16 sps:$4 sm:$0xff]  }
  0x39   : > { %1087 = vmatprep.subr.bf16.mxu0 %v1801_v53  ;;  %1193 = vmatprep.subr.bf16.mxu1 %v1803_v54  ;;  %v1896_v53 = vld [vmem:[%s2529_s2 + $0x384] ss:$16 sps:$4 sm:$0xff]   ;;  %v1899_v54 = vld [vmem:[%s2529_s2 + $0x38c] ss:$16 sps:$4 sm:$0xff]  }
  0x3c   : > { %1088 = vmatpush1.bf16.msra.mxu0 %v1805_v55  ;;  %1194 = vmatpush1.bf16.msra.mxu1 %v1806_v56  ;;  %v1894_v55 = vld [vmem:[%s2529_s2 + $0x380] ss:$16 sps:$4 sm:$0xff]   ;;  %v1897_v56 = vld [vmem:[%s2529_s2 + $0x388] ss:$16 sps:$4 sm:$0xff]  }
  0x3d   : > { %1089 = vmatprep.subr.bf16.mxu0 %v1807_v57  ;;  %1195 = vmatprep.subr.bf16.mxu1 %v1809_v58  ;;  %v1902_v57 = vld [vmem:[%s2529_s2 + $0x3a4] ss:$16 sps:$4 sm:$0xff]   ;;  %v1905_v58 = vld [vmem:[%s2529_s2 + $0x3ac] ss:$16 sps:$4 sm:$0xff]  }
  0x40   : > { %1090 = vmatpush1.bf16.msra.mxu0 %v1811_v59  ;;  %1196 = vmatpush1.bf16.msra.mxu1 %v1812_v60  ;;  %v1900_v59 = vld [vmem:[%s2529_s2 + $0x3a0] ss:$16 sps:$4 sm:$0xff]   ;;  %v1903_v60 = vld [vmem:[%s2529_s2 + $0x3a8] ss:$16 sps:$4 sm:$0xff]  }
  0x41   : > { %1091 = vmatprep.subr.bf16.mxu0 %v1813_v61  ;;  %1197 = vmatprep.subr.bf16.mxu1 %v1815_v62  ;;  %v1911_v61 = vld [vmem:[%s2529_s2 + $0x3c4] ss:$16 sps:$4 sm:$0xff]   ;;  %v1914_v62 = vld [vmem:[%s2529_s2 + $0x3cc] ss:$16 sps:$4 sm:$0xff]  }
  0x44   : > { %1092 = vmatpush1.bf16.msra.mxu0 %v1817_v63  ;;  %1198 = vmatpush1.bf16.msra.mxu1 %v1818_v0  ;;  %v1909_v63 = vld [vmem:[%s2529_s2 + $0x3c0] ss:$16 sps:$4 sm:$0xff]   ;;  %v1912_v0 = vld [vmem:[%s2529_s2 + $0x3c8] ss:$16 sps:$4 sm:$0xff]  }
  0x45   : > { %1114 = vmatprep.subr.bf16.mxu0 %v1824_v1  ;;  %1220 = vmatprep.subr.bf16.mxu1 %v1827_v2  ;;  %v1917_v1 = vld [vmem:[%s2529_s2 + $0x3e4] ss:$16 sps:$4 sm:$0xff]   ;;  %v1920_v2 = vld [vmem:[%s2529_s2 + $0x3ec] ss:$16 sps:$4 sm:$0xff]  }
  0x47   : > { %1094 = vmatmul.mubr.bf16.vlgmr.msra.gmra.mrb[0].mxu0 %v1819_v3  ;;  %1200 = vmatmul.mubr.bf16.vlgmr.msra.gmra.mrb[0].mxu1 %v1819_v3  ;;  %v1915_v3 = vld [vmem:[%s2529_s2 + $0x3e0] ss:$16 sps:$4 sm:$0xff]  }
  0x48   : > { %1115 = vmatpush1.bf16.msra.mxu0 %v1822_v4  ;;  %1221 = vmatpush1.bf16.msra.mxu1 %v1825_v5  ;;  %v1918_v4 = vld [vmem:[%s2529_s2 + $0x3e8] ss:$16 sps:$4 sm:$0xff]  }
  0x49   : > { %1116 = vmatprep.subr.bf16.mxu0 %v1830_v6  ;;  %1222 = vmatprep.subr.bf16.mxu1 %v1833_v7  ;;  %v1921_v5 = vld [vmem:[%s2154_s17 + $0x8] ss:$16 sps:$4 sm:$0xff]   ;;  %v1924_v6 = vld [vmem:[%s2274_s5 + $0xc] ss:$16 sps:$4 sm:$0xff]   ;;  %s1538_s17 = sshll.u32 %s2536_s12, 3 }
  0x4a   : > { %1103 = vmatprep.mubr.bf16.mxu0 %v1906_v25  ;;  %1209 = vmatprep.mubr.bf16.mxu1 %v1906_v25  ;;  %v1926_v7 = vld [vmem:[%s2274_s5 + $0x8] ss:$16 sps:$4 sm:$0xff]   ;;  %s238_s19 = scalar_lea.vmem %s2530_s3, %s1538_s17 }
  0x4c   : > { %1117 = vmatpush1.bf16.msra.mxu0 %v1828_v8  ;;  %1223 = vmatpush1.bf16.msra.mxu1 %v1831_v9  ;;  %v1273_v8 = vlaneseq }
  0x4d   : > { %1118 = vmatprep.subr.bf16.mxu0 %v1836_v10  ;;  %1224 = vmatprep.subr.bf16.mxu1 %v1839_v11 }
  0x4e   : > { %v1274_v9 = vand.u32 127, %v1273_v8 }
  0x4f   : > { %1104 = vmatmul.mubr.bf16.gmra.mrb[4].mxu0 %v1908_v27  ;;  %1210 = vmatmul.mubr.bf16.gmra.mrb[4].mxu1 %v1908_v27 }
  0x50   : > { %1119 = vmatpush1.bf16.msra.mxu0 %v1834_v12  ;;  %1225 = vmatpush1.bf16.msra.mxu1 %v1837_v13  ;;  %vm1276_vm0 = vcmp.eq.s32.totalorder %v1274_v9, 0 }
  0x51   : > { %1120 = vmatprep.subr.bf16.mxu0 %v1842_v14  ;;  %1226 = vmatprep.subr.bf16.mxu1 %v1845_v15 }
  0x52   : > { %1146 = vmatprep.mubr.bf16.mxu0 %v1923_v34  ;;  %1252 = vmatprep.mubr.bf16.mxu1 %v1923_v34 }
  0x54   : > { %1121 = vmatpush1.bf16.msra.mxu0 %v1840_v16  ;;  %1227 = vmatpush1.bf16.msra.mxu1 %v1843_v17 }
  0x55   : > { %1122 = vmatprep.subr.bf16.mxu0 %v1848_v18  ;;  %1228 = vmatprep.subr.bf16.mxu1 %v1851_v19 }
  0x58   : > { %1123 = vmatpush1.bf16.msra.mxu0 %v1846_v20  ;;  %1229 = vmatpush1.bf16.msra.mxu1 %v1849_v21 }
  0x59   : > { %1124 = vmatprep.subr.bf16.mxu0 %v1854_v22  ;;  %1230 = vmatprep.subr.bf16.mxu1 %v1857_v23 }
  0x5c   : > { %1125 = vmatpush1.bf16.msra.mxu0 %v1852_v24  ;;  %1231 = vmatpush1.bf16.msra.mxu1 %v1855_v26 }
  0x5d   : > { %1126 = vmatprep.subr.bf16.mxu0 %v1860_v28  ;;  %1232 = vmatprep.subr.bf16.mxu1 %v1863_v29 }
  0x60   : > { %1127 = vmatpush1.bf16.msra.mxu0 %v1858_v30  ;;  %1233 = vmatpush1.bf16.msra.mxu1 %v1861_v31 }
  0x61   : > { %1128 = vmatprep.subr.bf16.mxu0 %v1866_v32  ;;  %1234 = vmatprep.subr.bf16.mxu1 %v1869_v33 }
  0x64   : > { %1129 = vmatpush1.bf16.msra.mxu0 %v1864_v35  ;;  %1235 = vmatpush1.bf16.msra.mxu1 %v1867_v36 }
  0x65   : > { %1130 = vmatprep.subr.bf16.mxu0 %v1872_v37  ;;  %1236 = vmatprep.subr.bf16.mxu1 %v1875_v38 }
  0x68   : > { %1131 = vmatpush1.bf16.msra.mxu0 %v1870_v39  ;;  %1237 = vmatpush1.bf16.msra.mxu1 %v1873_v40 }
  0x69   : > { %1132 = vmatprep.subr.bf16.mxu0 %v1878_v41  ;;  %1238 = vmatprep.subr.bf16.mxu1 %v1881_v42 }
  0x6c   : > { %1133 = vmatpush1.bf16.msra.mxu0 %v1876_v43  ;;  %1239 = vmatpush1.bf16.msra.mxu1 %v1879_v44 }
  0x6d   : > { %1134 = vmatprep.subr.bf16.mxu0 %v1884_v45  ;;  %1240 = vmatprep.subr.bf16.mxu1 %v1887_v46 }
  0x70   : > { %1135 = vmatpush1.bf16.msra.mxu0 %v1882_v47  ;;  %1241 = vmatpush1.bf16.msra.mxu1 %v1885_v48 }
  0x71   : > { %1136 = vmatprep.subr.bf16.mxu0 %v1890_v49  ;;  %1242 = vmatprep.subr.bf16.mxu1 %v1893_v50 }
  0x74   : > { %1137 = vmatpush1.bf16.msra.mxu0 %v1888_v51  ;;  %1243 = vmatpush1.bf16.msra.mxu1 %v1891_v52 }
  0x75   : > { %1138 = vmatprep.subr.bf16.mxu0 %v1896_v53  ;;  %1244 = vmatprep.subr.bf16.mxu1 %v1899_v54 }
  0x78   : > { %1139 = vmatpush1.bf16.msra.mxu0 %v1894_v55  ;;  %1245 = vmatpush1.bf16.msra.mxu1 %v1897_v56 }
  0x79   : > { %1140 = vmatprep.subr.bf16.mxu0 %v1902_v57  ;;  %1246 = vmatprep.subr.bf16.mxu1 %v1905_v58 }
  0x7c   : > { %1141 = vmatpush1.bf16.msra.mxu0 %v1900_v59  ;;  %1247 = vmatpush1.bf16.msra.mxu1 %v1903_v60 }
  0x7d   : > { %1142 = vmatprep.subr.bf16.mxu0 %v1911_v61  ;;  %1248 = vmatprep.subr.bf16.mxu1 %v1914_v62 }
  0x80   : > { %1143 = vmatpush1.bf16.msra.mxu0 %v1909_v63  ;;  %1249 = vmatpush1.bf16.msra.mxu1 %v1912_v0 }
  0x81   : > { %1144 = vmatprep.subr.bf16.mxu0 %v1917_v1  ;;  %1250 = vmatprep.subr.bf16.mxu1 %v1920_v2 }
  0x84   : > { %1145 = vmatpush1.bf16.msra.mxu0 %v1915_v3  ;;  %1251 = vmatpush1.bf16.msra.mxu1 %v1918_v4 }
  0x87   : > { %1147 = vmatmul.mubr.bf16.vlgmr.msra.gmra.mrb[0].mxu0 %v1921_v5  ;;  %1253 = vmatmul.mubr.bf16.vlgmr.msra.gmra.mrb[0].mxu1 %v1921_v5 }
  0x88   : > { %1156 = vmatprep.mubr.bf16.mxu0 %v1924_v6  ;;  %1262 = vmatprep.mubr.bf16.mxu1 %v1924_v6 }
  0x8f   : > { %1157 = vmatmul.mubr.bf16.gmra.mrb[4].mxu0 %v1926_v7  ;;  %1263 = vmatmul.mubr.bf16.gmra.mrb[4].mxu1 %v1926_v7 }
 0x15a   : > { %v1148_v10 = vpop.f32.mrb[0].mxu0  ;;  %v1254_v11 = vpop.f32.mrb[0].mxu1 }
 0x15b   : > { %v1298_v12 = vmul.f32 %v1148_v10, %v1148_v10  ;;  %v1282_v13 = vsel %vm1276_vm0, 0.0, %v1254_v11  ;;  %v1150_v14 = vpop.f32.mrb[1].mxu0  ;;  %v1256_v15 = vpop.f32.mrb[1].mxu1  ;;  %v1290_v28 = vsel %vm1276_vm0, %v1254_v11, 0.0 }
 0x15c   : > { %v1306_v16 = vmul.f32 %v1282_v13, %v1282_v13  ;;  %v1299_v17 = vmul.f32 %v1150_v14, %v1150_v14  ;;  %v1307_v18 = vmul.f32 %v1256_v15, %v1256_v15  ;;  %v1152_v19 = vpop.f32.mrb[2].mxu0  ;;  %v1258_v20 = vpop.f32.mrb[2].mxu1  ;;  %v1378_v33 = vand.u32 2147483647, %v1290_v28 }
 0x15d   : > { %v1300_v21 = vmul.f32 %v1152_v19, %v1152_v19  ;;  %v1284_v22 = vsel %vm1276_vm0, 0.0, %v1258_v20  ;;  %v1154_v23 = vpop.f32.mrb[3].mxu0  ;;  %v1260_v24 = vpop.f32.mrb[3].mxu1  ;;  %v1292_v34 = vsel %vm1276_vm0, %v1258_v20, 0.0 }
 0x15e   : > { %v2423_v25 = vadd.f32 %v1306_v16, %v1298_v12  ;;  %v2425_v26 = vadd.f32 %v1307_v18, %v1299_v17  ;;  %v1308_v27 = vmul.f32 %v1284_v22, %v1284_v22  ;;  %v1301_v29 = vmul.f32 %v1154_v23, %v1154_v23 }
 0x15f   : > { %v1309_v30 = vmul.f32 %v1260_v24, %v1260_v24  ;;  %v1380_v57 = vand.u32 2147483647, %v1292_v34 }
 0x160   : > { %1927 = vrsqrt.f32 %v2423_v25  ;;  %v2429_v31 = vadd.f32 %v1308_v27, %v1300_v21  ;;  %vm1324_vm1 = vcmp.eq.f32.partialorder %v2423_v25, inf  ;;  %vm1326_vm2 = vcmp.eq.f32.partialorder %v2423_v25, 0.0 }
 0x161   : > { %1929 = vrsqrt.f32 %v2425_v26  ;;  %v2432_v32 = vadd.f32 %v1309_v30, %v1301_v29  ;;  %v1327_v4 = vand.u32 2147483648, %v2423_v25  ;;  %vm1331_vm3 = vcmp.eq.f32.partialorder %v2425_v26, inf }
 0x162   : > { %v1158_v35 = vpop.f32.mrb[4].mxu0  ;;  %v1264_v36 = vpop.f32.mrb[4].mxu1  ;;  %1931 = vrsqrt.f32 %v2429_v31  ;;  %vm1333_vm4 = vcmp.eq.f32.partialorder %v2425_v26, 0.0  ;;  %v1334_v6 = vand.u32 2147483648, %v2425_v26  ;;  %vm1338_vm5 = vcmp.eq.f32.partialorder %v2429_v31, inf }
 0x163   : > { %v1302_v37 = vmul.f32 %v1158_v35, %v1158_v35  ;;  %v1286_v38 = vsel %vm1276_vm0, 0.0, %v1264_v36  ;;  %v1294_v39 = vsel %vm1276_vm0, %v1264_v36, 0.0  ;;  %v1160_v40 = vpop.f32.mrb[5].mxu0  ;;  %v1266_v41 = vpop.f32.mrb[5].mxu1  ;;  %1933 = vrsqrt.f32 %v2432_v32 }
 0x164   : > { %v1310_v42 = vmul.f32 %v1286_v38, %v1286_v38  ;;  %v1382_v43 = vand.u32 2147483647, %v1294_v39  ;;  %v1303_v44 = vmul.f32 %v1160_v40, %v1160_v40  ;;  %v1311_v45 = vmul.f32 %v1266_v41, %v1266_v41  ;;  %v1162_v46 = vpop.f32.mrb[6].mxu0  ;;  %v1268_v47 = vpop.f32.mrb[6].mxu1 }
 0x165   : > { %v1304_v48 = vmul.f32 %v1162_v46, %v1162_v46  ;;  %v1288_v49 = vsel %vm1276_vm0, 0.0, %v1268_v47  ;;  %v1296_v50 = vsel %vm1276_vm0, %v1268_v47, 0.0  ;;  %v1164_v51 = vpop.f32.mrb[7].mxu0  ;;  %v1270_v52 = vpop.f32.mrb[7].mxu1  ;;  %vm1340_vm8 = vcmp.eq.f32.partialorder %v2429_v31, 0.0 }
 0x166   : > { %v1318_v53 = vadd.f32 %v1310_v42, %v1302_v37  ;;  %v1390_v54 = vsub.f32 %v1378_v33, %v1382_v43  ;;  %v2441_v55 = vadd.f32 %v1311_v45, %v1303_v44  ;;  %v1312_v56 = vmul.f32 %v1288_v49, %v1288_v49 }
 0x167   : > { %v1384_v58 = vand.u32 2147483647, %v1296_v50  ;;  %v1305_v59 = vmul.f32 %v1164_v51, %v1164_v51  ;;  %v1313_v60 = vmul.f32 %v1270_v52, %v1270_v52  ;;  %v1341_v9 = vand.u32 2147483648, %v2429_v31 }
 0x168   : > { %1935 = vrsqrt.f32 %v1318_v53  ;;  %v2443_v61 = vadd.f32 %v1312_v56, %v1304_v48  ;;  %vm1352_vm6 = vcmp.eq.f32.partialorder %v1318_v53, inf  ;;  %vm1354_vm7 = vcmp.eq.f32.partialorder %v1318_v53, 0.0 }
 0x169   : > { %1937 = vrsqrt.f32 %v2441_v55  ;;  %v2446_v62 = vsub.f32 %v1380_v57, %v1384_v58  ;;  %v2448_v63 = vadd.f32 %v1313_v60, %v1305_v59  ;;  %v1355_v11 = vand.u32 2147483648, %v1318_v53 }
 0x16a   : > { %v1928_v0 = vpop.eup %1927  ;;  %1939 = vrsqrt.f32 %v2443_v61  ;;  %vm1359_vm9 = vcmp.eq.f32.partialorder %v2441_v55, inf  ;;  %vm1361_vm10 = vcmp.eq.f32.partialorder %v2441_v55, 0.0  ;;  %v1362_v14 = vand.u32 2147483648, %v2441_v55 }
 0x16b   : > { %v1930_v1 = vpop.eup %1929  ;;  %1941 = vrsqrt.f32 %v2448_v63  ;;  %v1323_v2 = vmul.f32 %v1928_v0, %v2423_v25  ;;  %v1398_v15 = vmul.f32 %v1390_v54, %v1390_v54  ;;  %vm1345_vm11 = vcmp.eq.f32.partialorder %v2432_v32, inf }
 0x16c   : > { %v1932_v3 = vpop.eup %1931  ;;  %v1330_v5 = vmul.f32 %v1930_v1, %v2425_v26  ;;  %vm1347_vm12 = vcmp.eq.f32.partialorder %v2432_v32, 0.0  ;;  %v1348_v18 = vand.u32 2147483648, %v2432_v32  ;;  %vm1366_vm13 = vcmp.eq.f32.partialorder %v2443_v61, inf }
 0x16d   : > { %v1934_v7 = vpop.eup %1933  ;;  %v1325_v10 = vsel %vm1324_vm1, %v2423_v25, %v1323_v2  ;;  %v1337_v12 = vmul.f32 %v1932_v3, %v2429_v31  ;;  %vm1368_vm14 = vcmp.eq.f32.partialorder %v2443_v61, 0.0  ;;  %v1369_v28 = vand.u32 2147483648, %v2443_v61 }
 0x16e   : > { %v1332_v13 = vsel %vm1331_vm3, %v2425_v26, %v1330_v5  ;;  %v1344_v17 = vmul.f32 %v1934_v7, %v2432_v32  ;;  %v1328_v20 = vsel %vm1326_vm2, %v1327_v4, %v1325_v10  ;;  %vm1373_vm15 = vcmp.eq.f32.partialorder %v2448_v63, inf }
 0x16f   : > { %v1335_v23 = vsel %vm1333_vm4, %v1334_v6, %v1332_v13  ;;  %v1339_v27 = vsel %vm1338_vm5, %v2429_v31, %v1337_v12  ;;  %vm1375_vm0 = vcmp.eq.f32.partialorder %v2448_v63, 0.0  ;;  %v1376_v39 = vand.u32 2147483648, %v2448_v63 }
 0x170   : > { %v1346_v34 = vsel %vm1345_vm11, %v2432_v32, %v1344_v17  ;;  %v1342_v41 = vsel %vm1340_vm8, %v1341_v9, %v1339_v27  ;;  %v1400_v49 = vmul.f32 %v2446_v62, %v2446_v62  ;;  %vm243_vm1 = vcmask 0  }
 0x171   : > { %v1349_v45 = vsel %vm1347_vm12, %v1348_v18, %v1346_v34  ;;  %v1967_v56 = vmov 0.0   ;;  %v1968_v32 = vmov 0   ;;  %v1430_v4 = vshrl.u32 %v1273_v8, 7 }
 0x172   : > { %v1936_v16 = vpop.eup %1935  ;;  %244 = vst.msk [vmem:[#allocation2] sm:$0x1] %vm243_vm1, %v1967_v56  ;;  %1721 = vset.pattern.permute.xlu1 %v1968_v32  ;;  %1722 = vset.pattern.permute.xlu0 %v1968_v32 }
 0x173   : > { %v1938_v19 = vpop.eup %1937  ;;  %v1351_v21 = vmul.f32 %v1936_v16, %v1318_v53  ;;  %v1431_v5 = vsub.s32 0, %v1430_v4 }
 0x174   : > { %v1940_v22 = vpop.eup %1939  ;;  %v1358_v24 = vmul.f32 %v1938_v19, %v2441_v55 }
 0x175   : > { %v1942_v29 = vpop.eup %1941  ;;  %v1353_v25 = vsel %vm1352_vm6, %v1318_v53, %v1351_v21  ;;  %v1365_v30 = vmul.f32 %v1940_v22, %v2443_v61 }
 0x176   : > { %v1356_v26 = vsel %vm1354_vm7, %v1355_v11, %v1353_v25  ;;  %v1360_v33 = vsel %vm1359_vm9, %v2441_v55, %v1358_v24  ;;  %v1372_v35 = vmul.f32 %v1942_v29, %v2448_v63 }
 0x177   : > { %v1363_v36 = vsel %vm1361_vm10, %v1362_v14, %v1360_v33  ;;  %v1386_v37 = vsub.f32 %v1328_v20, %v1356_v26  ;;  %v1367_v38 = vsel %vm1366_vm13, %v2443_v61, %v1365_v30 }
 0x178   : > { %v1387_v40 = vsub.f32 %v1335_v23, %v1363_v36  ;;  %v1370_v42 = vsel %vm1368_vm14, %v1369_v28, %v1367_v38  ;;  %v1374_v43 = vsel %vm1373_vm15, %v2448_v63, %v1372_v35 }
 0x179   : > { %v1394_v44 = vmul.f32 %v1386_v37, %v1386_v37  ;;  %v1377_v46 = vsel %vm1375_vm0, %v1376_v39, %v1374_v43  ;;  %v1388_v47 = vsub.f32 %v1342_v41, %v1370_v42  ;;  %v1412_v1 = vld [vmem:[#allocation2] sm:$0x1] }
 0x17a   : > { %v1389_v48 = vsub.f32 %v1349_v45, %v1377_v46  ;;  %v1395_v50 = vmul.f32 %v1387_v40, %v1387_v40 }
 0x17b   : > { %v1402_v51 = vadd.f32 %v1398_v15, %v1394_v44  ;;  %v1396_v52 = vmul.f32 %v1388_v47, %v1388_v47 }
 0x17c   : > { %v1397_v53 = vmul.f32 %v1389_v48, %v1389_v48 }
 0x17d   : > { %v1406_v31 = vadd.f32 %v1402_v51, %v1395_v50  ;;  %v1404_v54 = vadd.f32 %v1400_v49, %v1396_v52 }
 0x17f   : > { %1407 = vadd.xlane.f32.xlu0 %v1406_v31  ;;  %v1409_v55 = vadd.f32 %v1404_v54, %v1397_v53 }
 0x183   : > { %1410 = vadd.xlane.f32.xlu0 %v1409_v55 }
 0x20c   : > { %v1408_v57 = vpop.xlane.xlu0 %1407 }
 0x210   : > { %v1411_v58 = vpop.xlane.xlu0 %1410 }
 0x211   : > { %v1413_v59 = vadd.f32 %v1411_v58, %v1408_v57 }
 0x213   : > { %v1414_v60 = vrot.slane %v1413_v59, 4 }
 0x215   : > { %v1415_v61 = vadd.f32 %v1414_v60, %v1413_v59 }
 0x217   : > { %v1416_v62 = vrot.slane %v1415_v61, 2 }
 0x219   : > { %v1417_v63 = vadd.f32 %v1416_v62, %v1415_v61 }
 0x21b   : > { %v1418_v0 = vrot.slane %v1417_v63, 1 }
 0x21d   : > { %v1419_v2 = vadd.f32 %v1418_v0, %v1417_v63 }
 0x21f   : > { %v1420_v3 = vadd.f32 %v1419_v2, %v1412_v1 }
 0x221   : > { %1422 = vst.msk [vmem:[#allocation2] sm:$0x1] %vm243_vm1, %v1420_v3 }
 0x228   : > { %v1426_v6 = vld [vmem:[#allocation2] sm:$0x1] }
 0x229   : > { %v1427_v7 = vmul.f32 0.00025940337, %v1426_v6 }
 0x22b   : > { %v1432_v9 = vrot.slane %v1427_v7, %v1431_v5 }
 0x22d   : > { %1434 = vperm.xlu1 %1721, %v1432_v9  }
 0x2ac   : > { %v1435_v10 = vpop.permute.xlu1 %1434 }
 0x2ad   : > { %1437 = vst [vmem:[%s238_s19] sm:$0xff] %v1435_v10 }
 0x2ae PF: > { %s13_s14 = sadd.s32 1, %s1965_s14   ;;  %s2531_s12 = smov %s1961_s13 }
 0x2af   : > { %p10_p5 = scmp.ge.s32.totalorder %s13_s14, 4   ;;  %s2532_s13 = smov %s2534_s15 }
 0x2b1   :  { %12 = sbr.rel (!%p10_p5) target bundleno = 2 (0x2), region = 73 }

</bundles_post_ra>
